<compile_context>
chip_gen: v7x
topology: tpu7x:2x2x1
jax: 0.10.0
libtpu: 0.0.40
codegen_flags: <defaults>
</compile_context>

<pallas_src>
import functools

import jax
import jax.numpy as jnp
import numpy as np
from jax.experimental import pallas as pl
from jax.experimental.pallas import tpu as pltpu


def _same_pad(kernel_size, dilation):
    total = dilation * (kernel_size - 1)
    left = total // 2          # PyTorch padding='same' convention
    return left, total - left


def _round_up(v, m):
    return (v + m - 1) // m * m


def _temporal_block_kernel(x_ref, w1_ref, b1_ref, a1_ref,
                           w2_ref, b2_ref, a2_ref, *rest,
                           K, dilation, L, TL, TLh, Wx, left2, halo_l,
                           has_downsample, use_im2col):
    """One (batch, L-tile) step.

    x_ref   : (1, C_in_p, L_total) bf16  once-padded row, resident per batch
    w1_ref  : (C_h_p, K*C_in_p)    bf16  im2col-flattened conv1 weight
    w2_ref  : (C_out_p, K*C_h_p)   bf16  im2col-flattened conv2 weight
    b*_ref  : (C, 1) f32; a*_ref: (1,) f32 in SMEM (shared PReLU slope)
    out_ref : (1, C_out_p, TL)     lane-dense output tile
    """
    if has_downsample:
        wd_ref, bd_ref, out_ref = rest
    else:
        (out_ref,) = rest

    j = pl.program_id(1)
    start = pl.multiple_of(j * TL, 128)
    # Lane-aligned dynamic window into the batch-resident padded row (no
    # host-side overlapping-window gather / halo duplication in HBM).
    x_win = x_ref[0, :, pl.ds(start, Wx)]                  # (C_in_p, Wx) bf16

    def dilated_conv(w_ref, src, out_len):
        c_rows = src.shape[0]
        if use_im2col:
            slab = jnp.concatenate(
                [src[:, k * dilation:k * dilation + out_len] for k in range(K)],
                axis=0)
            return jnp.dot(w_ref[...], slab, preferred_element_type=jnp.float32)
        # Large-channel fallback: K accumulating matmuls on shifted views
        # (avoids materializing a K*C-wide slab / vreg spills).
        w = w_ref[...]
        acc = jnp.dot(w[:, :c_rows], src[:, :out_len],
                      preferred_element_type=jnp.float32)
        for k in range(1, K):
            acc = acc + jnp.dot(w[:, k * c_rows:(k + 1) * c_rows],
                                src[:, k * dilation:k * dilation + out_len],
                                preferred_element_type=jnp.float32)
        return acc

    # ---- conv1 (dilated, 'same') over the extended (TL + left2 + right2) window
    h = dilated_conv(w1_ref, x_win, TLh) + b1_ref[...]     # (C_h_p, TLh) f32
    a1 = a1_ref[0]
    h = jnp.where(h >= 0, h, a1 * h)                       # PReLU (f32)
    # PyTorch 'same' zero-pads conv1's *length-L* output before conv2: zero the
    # extended-window columns whose global hidden position is outside [0, L).
    t = jax.lax.broadcasted_iota(jnp.int32, (1, TLh), 1)
    g = j * TL - left2 + t
    h = jnp.where(jnp.logical_and(g >= 0, g < L), h, 0.0)
    # TODO(synk): dropout(p=0.05) modeled as inference-mode identity (no RNG mask).

    # ---- conv2 (dilated, 'same'); reads shifted views of h directly ----
    hc = h.astype(w2_ref.dtype)                            # bf16 MXU operand
    o = dilated_conv(w2_ref, hc, TL) + b2_ref[...]         # (C_out_p, TL) f32
    a2 = a2_ref[0]
    o = jnp.where(o >= 0, o, a2 * o)                       # PReLU (f32)
    # TODO(synk): dropout(p=0.05) modeled as inference-mode identity (no RNG mask).

    # ---- residual ----
    x_c = x_win[:, halo_l:halo_l + TL]                     # (C_in_p, TL) bf16
    if has_downsample:
        res = jnp.dot(wd_ref[...], x_c,
                      preferred_element_type=jnp.float32) + bd_ref[...]
    else:
        res = x_c.astype(jnp.float32)                      # identity residual

    out_ref[0, :, :] = (o + res).astype(out_ref.dtype)


def temporal_block_forward(x, params, *, kernel_size, dilation, tile_l=512,
                           compute_dtype=jnp.bfloat16, out_dtype=jnp.float32,
                           trim_output=True):
    """x: (B, C_in, L) float32. params: dict (see __main__).

    tile_l      : L tile, rounded up to a multiple of 128 (default 512 amortizes
                  per-step overhead and suits the 256-wide MXU on v6e/v7x).
    out_dtype   : jnp.bfloat16 halves output HBM traffic if the next block
                  consumes bf16 anyway (residual-chain precision tradeoff).
    trim_output : False returns the padded (B, C_out_p, NT*TL) layout so a
                  stacked TemporalBlock can consume it without an extra HBM
                  slice pass (padded rows/columns hold don't-care values).
    """
    B, C_in, L = x.shape
    K = kernel_size
    w1, b1, a1 = params["w1"], params["b1"], params["a1"]   # w1: (C_h, C_in, K)
    w2, b2, a2 = params["w2"], params["b2"], params["a2"]   # w2: (C_out, C_h, K)
    C_h, C_out = w1.shape[0], w2.shape[0]
    has_downsample = "wd" in params

    left1, right1 = _same_pad(K, dilation)
    left2, right2 = _same_pad(K, dilation)
    halo_l = left1 + left2
    halo_r = right1 + right2
    halo = halo_l + halo_r                                  # = 2 * dilation * (K-1)

    # Channel padding to multiples of 16: native bf16 tile is (16, 128).
    C_in_p = _round_up(C_in, 16)
    C_h_p = _round_up(C_h, 16)
    C_out_p = _round_up(C_out, 16)

    # Lane-dense L tiling: TL is a multiple of 128 (512 default => also 256).
    TL = min(_round_up(max(tile_l, 128), 128), _round_up(L, 128))
    NT = pl.cdiv(L, TL)
    Lp = NT * TL
    Wx = TL + halo                                          # per-step input window
    TLh = TL + left2 + right2                               # extended hidden len
    L_total = halo_l + Lp + halo_r

    # Single once-padded bf16 row per batch (read from HBM once per batch and
    # kept VMEM-resident across all NT L-tiles of that batch).
    xp = jnp.pad(x.astype(compute_dtype),
                 ((0, 0), (0, C_in_p - C_in), (halo_l, (Lp - L) + halo_r)))

    def _pad_w(w, co_p, ci_p):
        co, ci, _ = w.shape
        return jnp.pad(w, ((0, co_p - co), (0, ci_p - ci), (0, 0)))

    # im2col-flattened weights: column index = k * C_in_p + c_in.
    w1f = jnp.transpose(_pad_w(w1, C_h_p, C_in_p), (0, 2, 1)
                        ).reshape(C_h_p, K * C_in_p).astype(compute_dtype)
    w2f = jnp.transpose(_pad_w(w2, C_out_p, C_h_p), (0, 2, 1)
                        ).reshape(C_out_p, K * C_h_p).astype(compute_dtype)
    b1c = jnp.pad(b1, (0, C_h_p - C_h)).reshape(C_h_p, 1).astype(jnp.float32)
    b2c = jnp.pad(b2, (0, C_out_p - C_out)).reshape(C_out_p, 1).astype(jnp.float32)

    # Keep the in-register im2col slab well inside the vreg file; otherwise use
    # K accumulating matmuls on shifted views.
    slab_bytes = max(K * C_in_p * TLh, K * C_h_p * TL) * 2
    use_im2col = slab_bytes <= 128 * 1024

    kernel = functools.partial(
        _temporal_block_kernel, K=K, dilation=dilation, L=L, TL=TL, TLh=TLh,
        Wx=Wx, left2=left2, halo_l=halo_l, has_downsample=has_downsample,
        use_im2col=use_im2col)

    smem_spec = pl.BlockSpec(memory_space=pltpu.MemorySpace.SMEM)
    const2 = lambda b, j: (0, 0)                            # weights stay resident

    in_specs = [
        pl.BlockSpec((1, C_in_p, L_total), lambda b, j: (b, 0, 0)),   # x row
        pl.BlockSpec((C_h_p, K * C_in_p), const2),                    # w1 (im2col)
        pl.BlockSpec((C_h_p, 1), const2),                             # b1
        smem_spec,                                                    # a1 (PReLU)
        pl.BlockSpec((C_out_p, K * C_h_p), const2),                   # w2 (im2col)
        pl.BlockSpec((C_out_p, 1), const2),                           # b2
        smem_spec,                                                    # a2 (PReLU)
    ]
    inputs = [xp, w1f, b1c, a1.astype(jnp.float32),
              w2f, b2c, a2.astype(jnp.float32)]

    if has_downsample:
        wdp = jnp.pad(params["wd"],
                      ((0, C_out_p - C_out), (0, C_in_p - C_in))).astype(compute_dtype)
        bdc = jnp.pad(params["bd"], (0, C_out_p - C_out)
                      ).reshape(C_out_p, 1).astype(jnp.float32)
        in_specs += [pl.BlockSpec((C_out_p, C_in_p), const2),          # wd
                     pl.BlockSpec((C_out_p, 1), const2)]               # bd
        inputs += [wdp, bdc]

    # Derived VMEM budget: double-buffered blocks + kernel temporaries, with 2x
    # headroom, clamped to v7x's 64 MiB physical VMEM (v5e/v6e have 128 MiB).
    out_itemsize = jnp.dtype(out_dtype).itemsize
    block_bytes = (C_in_p * L_total * 2 + C_out_p * TL * out_itemsize
                   + (C_h_p * K * C_in_p + C_out_p * K * C_h_p) * 2
                   + (C_h_p + C_out_p) * 4)
    if has_downsample:
        block_bytes += C_out_p * C_in_p * 2 + C_out_p * 4
    temp_bytes = (C_in_p * Wx * 2 + C_h_p * TLh * 4 + K * C_in_p * TLh * 2
                  + K * C_h_p * TL * 2 + 2 * C_out_p * TL * 4)
    vmem_limit = int(min(64 * 1024 * 1024,
                         max(8 * 1024 * 1024, 2 * (2 * block_bytes + temp_bytes))))

    flops = 2 * B * L * (K * C_in * C_h + K * C_h * C_out
                         + (C_in * C_out if has_downsample else 0))
    bytes_accessed = int(B * C_in_p * L_total * 2                # input read
                         + B * C_out_p * Lp * out_itemsize       # output write
                         + (w1f.size + w2f.size) * 2
                         + (b1c.size + b2c.size) * 4)
    cost = pl.CostEstimate(flops=flops, transcendentals=0,
                           bytes_accessed=bytes_accessed)

    out = pl.pallas_call(
        kernel,
        out_shape=jax.ShapeDtypeStruct((B, C_out_p, Lp), out_dtype),
        grid_spec=pltpu.PrefetchScalarGridSpec(
            num_scalar_prefetch=0,
            grid=(B, NT),   # both axes parallel; B*NT >= 2 keeps both v7x TCs busy
            in_specs=in_specs,
            out_specs=pl.BlockSpec((1, C_out_p, TL), lambda b, j: (b, 0, j)),
        ),
        compiler_params=pltpu.CompilerParams(
            dimension_semantics=("parallel", "parallel"),
            vmem_limit_bytes=vmem_limit),
        cost_estimate=cost,
    )(*inputs)

    if trim_output:
        return out[:, :C_out, :L]
    return out


# ------------------------- pure-JAX reference -------------------------
def _conv1d_same_ref(x, w, b, dilation):
    K = w.shape[-1]
    L = x.shape[-1]
    left, right = _same_pad(K, dilation)
    xp = jnp.pad(x, ((0, 0), (0, 0), (left, right)))
    out = jnp.zeros((x.shape[0], w.shape[0], L), jnp.float32)
    for k in range(K):
        out = out + jnp.einsum("oi,bil->bol", w[:, :, k],
                               xp[:, :, k * dilation:k * dilation + L],
                               preferred_element_type=jnp.float32)
    return out + b[None, :, None].astype(jnp.float32)


def _prelu(v, a):
    return jnp.where(v >= 0, v, a * v)


def temporal_block_ref(x, params, *, kernel_size, dilation,
                       compute_dtype=jnp.bfloat16):
    cd = compute_dtype
    xc = x.astype(cd)
    h = _conv1d_same_ref(xc, params["w1"].astype(cd), params["b1"], dilation)
    h = _prelu(h, params["a1"][0])
    o = _conv1d_same_ref(h.astype(cd), params["w2"].astype(cd), params["b2"], dilation)
    o = _prelu(o, params["a2"][0])
    if "wd" in params:
        res = jnp.einsum("oi,bil->bol", params["wd"].astype(cd), xc,
                         preferred_element_type=jnp.float32) \
            + params["bd"][None, :, None].astype(jnp.float32)
    else:
        res = xc.astype(jnp.float32)
    return o + res


# ------------------------------ main ----------------------------------
if __name__ == "__main__":
    key = jax.random.PRNGKey(0)
    ks = jax.random.split(key, 12)

    # --- case 1: n_inputs != n_outputs (downsample 1x1 conv residual) ---
    B, C_in, C_h, C_out = 2, 4, 8, 6
    L, kernel_size, dilation = 256, 3, 2
    params = {
        "w1": jax.random.normal(ks[0], (C_h, C_in, kernel_size), jnp.float32) * 0.01,
        "b1": jax.random.uniform(ks[1], (C_h,), jnp.float32, -0.1, 0.1),
        "a1": jnp.array([0.25], jnp.float32),   # nn.PReLU default (single shared slope)
        "w2": jax.random.normal(ks[2], (C_out, C_h, kernel_size), jnp.float32) * 0.01,
        "b2": jax.random.uniform(ks[3], (C_out,), jnp.float32, -0.1, 0.1),
        "a2": jnp.array([0.25], jnp.float32),
        "wd": jax.random.normal(ks[4], (C_out, C_in), jnp.float32) * 0.01,
        "bd": jax.random.uniform(ks[5], (C_out,), jnp.float32, -0.1, 0.1),
    }
    x = jax.random.normal(ks[6], (B, C_in, L), jnp.float32)

    out = temporal_block_forward(x, params, kernel_size=kernel_size,
                                 dilation=dilation)
    out = jax.block_until_ready(out)
    ref = temporal_block_ref(x, params, kernel_size=kernel_size, dilation=dilation)
    np.testing.assert_allclose(np.asarray(out), np.asarray(ref),
                               rtol=1e-3, atol=1e-4)

    # --- case 2: n_inputs == n_outputs (identity residual, non-multiple L) ---
    C2 = 8
    L2 = 200
    params2 = {
        "w1": jax.random.normal(ks[7], (C2, C2, kernel_size), jnp.float32) * 0.01,
        "b1": jax.random.uniform(ks[8], (C2,), jnp.float32, -0.1, 0.1),
        "a1": jnp.array([0.25], jnp.float32),
        "w2": jax.random.normal(ks[9], (C2, C2, kernel_size), jnp.float32) * 0.01,
        "b2": jax.random.uniform(ks[10], (C2,), jnp.float32, -0.1, 0.1),
        "a2": jnp.array([0.25], jnp.float32),
    }
    x2 = jax.random.normal(ks[11], (B, C2, L2), jnp.float32)

    out2 = temporal_block_forward(x2, params2, kernel_size=kernel_size,
                                  dilation=dilation)
    out2 = jax.block_until_ready(out2)
    ref2 = temporal_block_ref(x2, params2, kernel_size=kernel_size, dilation=dilation)
    np.testing.assert_allclose(np.asarray(out2), np.asarray(ref2),
                               rtol=1e-3, atol=1e-4)

    print("KERNEL_OK")
</pallas_src>

<mosaic_0001>
module attributes {stable_mosaic.version = 11 : i64} {
  func.func @_temporal_block_kernel(%arg0: i32, %arg1: i32, %arg2: memref<1x16x264xbf16, #tpu.memory_space<vmem>>, %arg3: memref<16x48xbf16, #tpu.memory_space<vmem>>, %arg4: memref<16x1xf32, #tpu.memory_space<vmem>>, %arg5: memref<1xf32, #tpu.memory_space<smem>>, %arg6: memref<16x48xbf16, #tpu.memory_space<vmem>>, %arg7: memref<16x1xf32, #tpu.memory_space<vmem>>, %arg8: memref<1xf32, #tpu.memory_space<smem>>, %arg9: memref<16x16xbf16, #tpu.memory_space<vmem>>, %arg10: memref<16x1xf32, #tpu.memory_space<vmem>>, %arg11: memref<1x16x256xf32, #tpu.memory_space<vmem>>) attributes {dimension_semantics = [#tpu.dimension_semantics<parallel>, #tpu.dimension_semantics<parallel>], iteration_bounds = array<i64: 2, 1>, scalar_prefetch = 0 : i64, scratch_operands = 0 : i64, tpu.core_type = #tpu.core_type<tc>, window_params = [{transform_indices = @transform_0, window_bounds = array<i64: 1, 16, 264>}, {pipeline_mode = #tpu.pipeline_mode<synchronous>, transform_indices = @transform_1, window_bounds = array<i64: 16, 48>}, {pipeline_mode = #tpu.pipeline_mode<synchronous>, transform_indices = @transform_2, window_bounds = array<i64: 16, 1>}, {transform_indices = @transform_3, window_bounds = array<i64: 1>}, {pipeline_mode = #tpu.pipeline_mode<synchronous>, transform_indices = @transform_4, window_bounds = array<i64: 16, 48>}, {pipeline_mode = #tpu.pipeline_mode<synchronous>, transform_indices = @transform_5, window_bounds = array<i64: 16, 1>}, {transform_indices = @transform_6, window_bounds = array<i64: 1>}, {pipeline_mode = #tpu.pipeline_mode<synchronous>, transform_indices = @transform_7, window_bounds = array<i64: 16, 16>}, {pipeline_mode = #tpu.pipeline_mode<synchronous>, transform_indices = @transform_8, window_bounds = array<i64: 16, 1>}, {transform_indices = @transform_9, window_bounds = array<i64: 1, 16, 256>}]} {
    %c256_i32 = arith.constant 256 : i32
    %0 = arith.muli %arg1, %c256_i32 : i32
    %1 = tpu.assume_multiple %0, 128 : i32
    %c0 = arith.constant 0 : index
    %c0_0 = arith.constant 0 : index
    %2 = arith.index_cast %1 : i32 to index
    %3 = vector.load %arg2[%c0, %c0_0, %2] : memref<1x16x264xbf16, #tpu.memory_space<vmem>>, vector<1x16x264xbf16>
    %4 = vector.shape_cast %3 : vector<1x16x264xbf16> to vector<16x264xbf16>
    %5 = vector.extract_strided_slice %4 {offsets = [0, 0], sizes = [16, 260], strides = [1, 1]} : vector<16x264xbf16> to vector<16x260xbf16>
    %6 = vector.extract_strided_slice %4 {offsets = [0, 2], sizes = [16, 260], strides = [1, 1]} : vector<16x264xbf16> to vector<16x260xbf16>
    %7 = vector.extract_strided_slice %4 {offsets = [0, 4], sizes = [16, 260], strides = [1, 1]} : vector<16x264xbf16> to vector<16x260xbf16>
    %8 = tpu.concatenate %5, %6, %7 in 0 : vector<16x260xbf16>, vector<16x260xbf16>, vector<16x260xbf16> -> vector<48x260xbf16>
    %c0_1 = arith.constant 0 : index
    %c0_2 = arith.constant 0 : index
    %9 = vector.load %arg3[%c0_1, %c0_2] : memref<16x48xbf16, #tpu.memory_space<vmem>>, vector<16x48xbf16>
    %cst = arith.constant dense<0.000000e+00> : vector<16x260xf32>
    %10 = tpu.matmul %9, %8, %cst {dimension_numbers = #tpu.dot_dimension_numbers<[1], [0], [0], [1], [0, 0, 1, 1], [], []>} : vector<16x48xbf16>, vector<48x260xbf16>, vector<16x260xf32> -> vector<16x260xf32>
    %c0_3 = arith.constant 0 : index
    %c0_4 = arith.constant 0 : index
    %11 = vector.load %arg4[%c0_3, %c0_4] : memref<16x1xf32, #tpu.memory_space<vmem>>, vector<16x1xf32>
    %12 = vector.broadcast %11 : vector<16x1xf32> to vector<16x260xf32>
    %13 = arith.addf %10, %12 : vector<16x260xf32>
    %c0_5 = arith.constant 0 : index
    %14 = memref.load %arg5[%c0_5] : memref<1xf32, #tpu.memory_space<smem>>
    %cst_6 = arith.constant 0.000000e+00 : f32
    %15 = vector.broadcast %cst_6 : f32 to vector<16x260xf32>
    %16 = arith.cmpf oge, %13, %15 : vector<16x260xf32>
    %17 = vector.broadcast %14 : f32 to vector<16x260xf32>
    %18 = arith.mulf %17, %13 : vector<16x260xf32>
    %19 = arith.select %16, %13, %18 : vector<16x260xi1>, vector<16x260xf32>
    %20 = tpu.iota {dimensions = array<i32: 1>} : vector<1x260xi32>
    %c256_i32_7 = arith.constant 256 : i32
    %21 = arith.muli %arg1, %c256_i32_7 : i32
    %c2_i32 = arith.constant 2 : i32
    %22 = arith.subi %21, %c2_i32 : i32
    %23 = vector.broadcast %22 : i32 to vector<1x260xi32>
    %24 = arith.addi %23, %20 : vector<1x260xi32>
    %c0_i32 = arith.constant 0 : i32
    %25 = vector.broadcast %c0_i32 : i32 to vector<1x260xi32>
    %26 = arith.cmpi sge, %24, %25 : vector<1x260xi32>
    %c256_i32_8 = arith.constant 256 : i32
    %27 = vector.broadcast %c256_i32_8 : i32 to vector<1x260xi32>
    %28 = arith.cmpi slt, %24, %27 : vector<1x260xi32>
    %29 = arith.andi %26, %28 : vector<1x260xi1>
    %cst_9 = arith.constant 0.000000e+00 : f32
    %30 = vector.shape_cast %29 : vector<1x260xi1> to vector<1x260xi1>
    %31 = vector.broadcast %30 : vector<1x260xi1> to vector<16x260xi1>
    %32 = vector.broadcast %cst_9 : f32 to vector<16x260xf32>
    %33 = arith.select %31, %19, %32 : vector<16x260xi1>, vector<16x260xf32>
    %34 = arith.truncf %33 : vector<16x260xf32> to vector<16x260xbf16>
    %35 = vector.extract_strided_slice %34 {offsets = [0, 0], sizes = [16, 256], strides = [1, 1]} : vector<16x260xbf16> to vector<16x256xbf16>
    %36 = vector.extract_strided_slice %34 {offsets = [0, 2], sizes = [16, 256], strides = [1, 1]} : vector<16x260xbf16> to vector<16x256xbf16>
    %37 = vector.extract_strided_slice %34 {offsets = [0, 4], sizes = [16, 256], strides = [1, 1]} : vector<16x260xbf16> to vector<16x256xbf16>
    %38 = tpu.concatenate %35, %36, %37 in 0 : vector<16x256xbf16>, vector<16x256xbf16>, vector<16x256xbf16> -> vector<48x256xbf16>
    %c0_10 = arith.constant 0 : index
    %c0_11 = arith.constant 0 : index
    %39 = vector.load %arg6[%c0_10, %c0_11] : memref<16x48xbf16, #tpu.memory_space<vmem>>, vector<16x48xbf16>
    %cst_12 = arith.constant dense<0.000000e+00> : vector<16x256xf32>
    %40 = tpu.matmul %39, %38, %cst_12 {dimension_numbers = #tpu.dot_dimension_numbers<[1], [0], [0], [1], [0, 0, 1, 1], [], []>} : vector<16x48xbf16>, vector<48x256xbf16>, vector<16x256xf32> -> vector<16x256xf32>
    %c0_13 = arith.constant 0 : index
    %c0_14 = arith.constant 0 : index
    %41 = vector.load %arg7[%c0_13, %c0_14] : memref<16x1xf32, #tpu.memory_space<vmem>>, vector<16x1xf32>
    %42 = vector.broadcast %41 : vector<16x1xf32> to vector<16x256xf32>
    %43 = arith.addf %40, %42 : vector<16x256xf32>
    %c0_15 = arith.constant 0 : index
    %44 = memref.load %arg8[%c0_15] : memref<1xf32, #tpu.memory_space<smem>>
    %cst_16 = arith.constant 0.000000e+00 : f32
    %45 = vector.broadcast %cst_16 : f32 to vector<16x256xf32>
    %46 = arith.cmpf oge, %43, %45 : vector<16x256xf32>
    %47 = vector.broadcast %44 : f32 to vector<16x256xf32>
    %48 = arith.mulf %47, %43 : vector<16x256xf32>
    %49 = arith.select %46, %43, %48 : vector<16x256xi1>, vector<16x256xf32>
    %50 = vector.extract_strided_slice %4 {offsets = [0, 4], sizes = [16, 256], strides = [1, 1]} : vector<16x264xbf16> to vector<16x256xbf16>
    %c0_17 = arith.constant 0 : index
    %c0_18 = arith.constant 0 : index
    %51 = vector.load %arg9[%c0_17, %c0_18] : memref<16x16xbf16, #tpu.memory_space<vmem>>, vector<16x16xbf16>
    %cst_19 = arith.constant dense<0.000000e+00> : vector<16x256xf32>
    %52 = tpu.matmul %51, %50, %cst_19 {dimension_numbers = #tpu.dot_dimension_numbers<[1], [0], [0], [1], [0, 0, 1, 1], [], []>} : vector<16x16xbf16>, vector<16x256xbf16>, vector<16x256xf32> -> vector<16x256xf32>
    %c0_20 = arith.constant 0 : index
    %c0_21 = arith.constant 0 : index
    %53 = vector.load %arg10[%c0_20, %c0_21] : memref<16x1xf32, #tpu.memory_space<vmem>>, vector<16x1xf32>
    %54 = vector.broadcast %53 : vector<16x1xf32> to vector<16x256xf32>
    %55 = arith.addf %52, %54 : vector<16x256xf32>
    %56 = arith.addf %49, %55 : vector<16x256xf32>
    %c0_22 = arith.constant 0 : index
    %c0_23 = arith.constant 0 : index
    %c0_24 = arith.constant 0 : index
    %57 = vector.load %arg11[%c0_22, %c0_23, %c0_24] : memref<1x16x256xf32, #tpu.memory_space<vmem>>, vector<1x16x256xf32>
    %58 = vector.shape_cast %57 : vector<1x16x256xf32> to vector<16x256xf32>
    %59 = vector.shape_cast %56 : vector<16x256xf32> to vector<1x16x256xf32>
    tpu.vector_store %arg11[%c0_22, %c0_23, %c0_24], %59 {strides = array<i32>} : memref<1x16x256xf32, #tpu.memory_space<vmem>>, vector<1x16x256xf32>,
    return
  }
  func.func @transform_0(%arg0: i32, %arg1: i32) -> (i32, i32, i32) {
    %c0_i32 = arith.constant 0 : i32
    %c0_i32_0 = arith.constant 0 : i32
    %c0_i32_1 = arith.constant 0 : i32
    return %arg0, %c0_i32, %c0_i32_0 : i32, i32, i32
  }
  func.func @transform_1(%arg0: i32, %arg1: i32) -> (i32, i32) {
    %c0_i32 = arith.constant 0 : i32
    %c0_i32_0 = arith.constant 0 : i32
    %c0_i32_1 = arith.constant 0 : i32
    return %c0_i32, %c0_i32_0 : i32, i32
  }
  func.func @transform_2(%arg0: i32, %arg1: i32) -> (i32, i32) {
    %c0_i32 = arith.constant 0 : i32
    %c0_i32_0 = arith.constant 0 : i32
    %c0_i32_1 = arith.constant 0 : i32
    return %c0_i32, %c0_i32_0 : i32, i32
  }
  func.func @transform_3(%arg0: i32, %arg1: i32) -> i32 {
    %c0_i32 = arith.constant 0 : i32
    %c0_i32_0 = arith.constant 0 : i32
    return %c0_i32 : i32
  }
  func.func @transform_4(%arg0: i32, %arg1: i32) -> (i32, i32) {
    %c0_i32 = arith.constant 0 : i32
    %c0_i32_0 = arith.constant 0 : i32
    %c0_i32_1 = arith.constant 0 : i32
    return %c0_i32, %c0_i32_0 : i32, i32
  }
  func.func @transform_5(%arg0: i32, %arg1: i32) -> (i32, i32) {
    %c0_i32 = arith.constant 0 : i32
    %c0_i32_0 = arith.constant 0 : i32
    %c0_i32_1 = arith.constant 0 : i32
    return %c0_i32, %c0_i32_0 : i32, i32
  }
  func.func @transform_6(%arg0: i32, %arg1: i32) -> i32 {
    %c0_i32 = arith.constant 0 : i32
    %c0_i32_0 = arith.constant 0 : i32
    return %c0_i32 : i32
  }
  func.func @transform_7(%arg0: i32, %arg1: i32) -> (i32, i32) {
    %c0_i32 = arith.constant 0 : i32
    %c0_i32_0 = arith.constant 0 : i32
    %c0_i32_1 = arith.constant 0 : i32
    return %c0_i32, %c0_i32_0 : i32, i32
  }
  func.func @transform_8(%arg0: i32, %arg1: i32) -> (i32, i32) {
    %c0_i32 = arith.constant 0 : i32
    %c0_i32_0 = arith.constant 0 : i32
    %c0_i32_1 = arith.constant 0 : i32
    return %c0_i32, %c0_i32_0 : i32, i32
  }
  func.func @transform_9(%arg0: i32, %arg1: i32) -> (i32, i32, i32) {
    %c0_i32 = arith.constant 0 : i32
    %c0_i32_0 = arith.constant 0 : i32
    return %arg0, %c0_i32, %arg1 : i32, i32, i32
  }
}

</mosaic_0001>

<bundles_post_ra>
// kernel: tpu_custom_call.1
= control target key start
LH: loop header
LB: loop body
LE: loop exit
PB: predicated region body
PF: predicated region fallthrough
CT: control target
= control target key end

     0   :  { %s1256_s0 = inlined_call_operand.vmem [shape: bf16[2,16,264], index: 0, kind: input, shape index: {}]   ;;  %s1257_s1 = inlined_call_operand.vmem [shape: bf16[16,48], index: 1, kind: input, shape index: {}]   ;;  %s1258_s2 = inlined_call_operand.vmem [shape: f32[16,1], index: 2, kind: input, shape index: {}]   ;;  %s1259_s3 = inlined_call_operand.<no memory space> [shape: f32[1], index: 3, kind: input, shape index: {}]   ;;  %s1260_s4 = inlined_call_operand.vmem [shape: bf16[16,48], index: 4, kind: input, shape index: {}]   ;;  %s1261_s5 = inlined_call_operand.vmem [shape: f32[16,1], index: 5, kind: input, shape index: {}]   ;;  %s1262_s6 = inlined_call_operand.<no memory space> [shape: f32[1], index: 6, kind: input, shape index: {}]   ;;  %s1263_s7 = inlined_call_operand.vmem [shape: bf16[16,16], index: 7, kind: input, shape index: {}]   ;;  %s1264_s8 = inlined_call_operand.vmem [shape: f32[16,1], index: 8, kind: input, shape index: {}]   ;;  %s1265_s9 = inlined_call_operand.hbm [shape: f32[2,16,256], index: 9, kind: output, shape index: {}]  }
   0x1   :  { %14 = sst [smem:[#allocation2]] %s1259_s3 }
   0x2   :  { %15 = sst [smem:[#allocation3]] %s1262_s6 }
   0x3   :  { %16 = vsyncpa [#allocation5], 0 }
   0x4   :  { %18 = vsyncpa [#allocation5 + $0x1], 0  ;;  %s1081_s13 = smov 0   ;;  %s1083_s14 = smov 0  }
   0x5   :  { %s1085_s15 = smov 0   ;;  %s1087_s16 = smov 0  }
   0x6   :  { %s1089_s17 = smov 0   ;;  %s1091_s18 = smov 0  }
   0x7 LB: > { %s825_s3 = sadd.s32 4294967295, %s1015_s18   ;;  %s826_s6 = sadd.s32 4294967294, %s1015_s18   ;;  %s1015_s18 = sphi %s1091_s18, %s24_s18   ;;  %s1011_s17 = sphi %s1089_s17, %s1272_s17   ;;  %s1007_s16 = sphi %s1087_s16, %s1271_s16   ;;  %s1003_s15 = sphi %s1085_s15, %s1270_s15   ;;  %s999_s14 = sphi %s1083_s14, %s1269_s14   ;;  %s995_s13 = sphi %s1081_s13, %s1268_s13  }
   0x8   : > { %s36_s19 = sadd.s32 1, %s1011_s17  ;;  %s239_s20 = sadd.s32 1, %s1003_s15 }
   0x9   : > { %p38_p0 = scmp.ge.s32.totalorder %s36_s19, 2  ;;  %p249_p1 = scmp.ne.s32.totalorder %s1003_s15, %s999_s14 }
   0xa   : > { %p250_p2 = scmp.eq.s32.totalorder %s825_s3, 1  ;;  %p255_p3 = scmp.ne.s32.totalorder %s999_s14, %s995_s13 }
   0xb   : > { %s1274_s19 = smov (%p38_p0, %s36_s19), 0  ;;  %p256_p5 = scmp.eq.s32.totalorder %s826_s6, 1 }
   0xc   : > { %p1121_p4 = por %p250_p2, %p249_p1  ;;  %s234_s22 = ssub.s32 %s1011_s17, %s1274_s19 }
   0xd   : > { %p829_p6 = scmp.ge.s32.totalorder %s1015_s18, 1  ;;  %p237_p7 = scmp.eq.s32.totalorder %s234_s22, 0 }
   0xe   : > { %p1128_p8 = por %p256_p5, %p255_p3  ;;  %p306_p9 = scmp.lt.s32.totalorder %s1015_s18, 3 }
   0xf   : > { %s1134_s24 = scalar_select %p237_p7, %s1003_s15, %s239_s20  }
  0x10   : > { %p307_p10 = pnand %p829_p6, %p306_p9 }
  0x11   : > { %p342_p11 = scmp.lt.s32.totalorder (!%p307_p10), %s1007_s16, 1  ;;  %v1017_v0 = vmov (!%p307_p10), 0.0   ;;  %vm1018_vm0 = vmmov (!%p307_p10), 0   ;;  %v1019_v3 = vmov (!%p307_p10), 0   ;;  %s1020_s30 = smov (!%p307_p10), 126   ;;  %v400_v5 = vld [vmem:[%s1258_s2] sm:$0xff] (!%p307_p10)  ;;  %v525_v19 = vlaneseq (!%p307_p10) }
  0x12   : > { %310 = sbr.rel (%p307_p10) target bundleno = 746 (0x2ea), region = 56  ;;  %855 = vmatprep.subr.bf16.mxu1 (!%p307_p10), %v1017_v0  ;;  %861 = vmatprep.mubr.msk.bf16.mxu1 (!%p307_p10), %vm1018_vm0, %v1017_v0  ;;  %s1021_s10 = smov (!%p307_p10), 124   ;;  %v401_v6 = vld [vmem:[%s1258_s2 + $0x8] sm:$0xff] (!%p307_p10)  ;;  %vm380_vm1 = vcmask (!%p307_p10), 1031168   ;;  %vm392_vm2 = vcmask (!%p307_p10), 1014784   ;;  %v934_v14 = vld [vmem:[%s1257_s1] sm:$0xff] (!%p307_p10)  }
  0x13   : > { %453 = vmatprep.mubr.bf16.mxu0 (!%p307_p10), %v1019_v3  ;;  %928 = vset.pattern.permute.xlu0 (!%p307_p10), %v1019_v3  ;;  %vm417_vm3 = vcmask (!%p307_p10), 392192   ;;  %v935_v18 = vld [vmem:[%s1263_s7] sm:$0xff] (!%p307_p10)   ;;  %vm679_vm4 = vcmask (!%p307_p10), 130048   ;;  %s505_s27 = sld [smem:[#allocation2]] (!%p307_p10)  ;;  %v526_v20 = vand.u32 (!%p307_p10), 127, %v525_v19  ;;  %v584_v61 = vld [vmem:[%s1261_s5 + $0x8] sm:$0xff] (!%p307_p10) }
  0x14   : > { %929 = vset.pattern.permute.xlu1 (!%p307_p10), %v1019_v3  ;;  %v583_v62 = vld [vmem:[%s1261_s5] sm:$0xff] (!%p307_p10)  ;;  %s850_s28 = sshll.u32 (!%p307_p10), %s1007_s16, 9  ;;  %s1022_s20 = smov (!%p307_p10), [#allocation4]  }
  0x15   : > { %v528_v21 = vadd.s32 (!%p307_p10), 256, %v526_v20  ;;  %v531_v31 = vadd.s32 (!%p307_p10), 4294967294, %v526_v20  ;;  %s1204_s6 = scalar_lea.hbm (!%p307_p10), %s1265_s9, %s850_s28 }
  0x17   : > { %v533_v26 = vadd.s32 (!%p307_p10), 4294967294, %v528_v21  ;;  %vm534_vm9 = vcmp.ge.s32.totalorder (!%p307_p10), %v531_v31, 0 }
  0x18   : > { %vm839_vm13 = vmpackc.low (!%p307_p10), %vm534_vm9, %vm534_vm9 }
  0x19   : > { %s343_s25 = scalar_select %p342_p11, %s1007_s16, 1  ;;  %v512_v24 = vstv %s505_s27  ;;  %vm539_vm6 = vcmp.lt.s32.totalorder %v533_v26, 256 }
  0x1b   : > { %s865_s26 = smul.u32 24, %s343_s25  ;;  %s646_s25 = sld [smem:[#allocation3]] }
  0x1d   : > { %s346_s29 = scalar_lea.vmem %s1256_s0, %s865_s26  ;;  %s339_s26 = sand.u32 1, %s999_s14  }
  0x1e   : > { %v930_v1 = vld [vmem:[%s346_s29 + $0x4] ss:$12 sps:$4 sm:$0xff]   ;;  %v932_v2 = vld [vmem:[%s346_s29] ss:$12 sps:$4 sm:$0xff]   ;;  %v933_v4 = vld [vmem:[%s346_s29 + $0x8] ss:$12 sps:$4 sm:$0xff]  }
  0x1f   : > { %376 = vrot.lane.b32.xlu0 %v930_v1, %s1020_s30  ;;  %421 = vmatprep.subr.bf16.mxu0 %v930_v1  ;;  %s830_s27 = sshll.u32 %s339_s26, 5  ;;  %s1210_s16 = scalar_lea.sflag [#allocation5], %s339_s26 }
  0x20   : > { %374 = vrot.lane.b32.xlu1 %v932_v2, %s1020_s30  ;;  %422 = vmatpush1.bf16.msra.mxu0 %v932_v2  ;;  %s341_s29 = scalar_lea.vmem [#allocation4], %s830_s27 }
  0x21   : > { %856 = vmatpush3.bf16.msra.mxu1 %v933_v4  ;;  %v651_v20 = vstv %s646_s25  ;;  %s750_s11 = sshll.u32 %s341_s29, 4  ;;  %s1206_s11 = int_to_ptr.vmem [resolvable:$true] %s750_s11 }
  0x22   : > { %857 = vmatprep.subr.bf16.mxu1 %v1017_v0 }
  0x23   : > { %378 = vrot.lane.b32.xlu0 %v933_v4, %s1020_s30 }
  0x24   : > { %388 = vrot.lane.b32.xlu1 %v930_v1, %s1021_s10  ;;  %v663_v1 = vld [vmem:[%s1264_s8 + $0x8] sm:$0xff] }
  0x27   : > { %390 = vrot.lane.b32.xlu0 %v933_v4, %s1021_s10 }
  0x28   : > { %386 = vrot.lane.b32.xlu1 %v932_v2, %s1021_s10 }
  0x2b   : > { %404 = vperm.xlu0 %928, %v400_v5  }
  0x2c   : > { %409 = vperm.xlu1 %929, %v401_v6  }
  0x91   : > { %v377_v7 = vpop.permute.xlu0 %376 }
  0x92   : > { %v375_v8 = vpop.permute.xlu1 %374 }
  0x93   : > { %v381_v12 = vsel %vm380_vm1, %v375_v8, %v377_v7 }
  0x95   : > { %v379_v9 = vpop.permute.xlu0 %378 }
  0x96   : > { %v389_v10 = vpop.permute.xlu1 %388  ;;  %858 = vmatpush3.bf16.msra.mxu1 %v379_v9  ;;  %v382_v11 = vsel %vm380_vm1, %v377_v7, %v379_v9 }
  0x97   : > { %423 = vmatprep.subr.bf16.mxu0 %v382_v11  ;;  %859 = vmatprep.subr.bf16.mxu1 %v1017_v0 }
  0x98   : > { %424 = vmatpush1.bf16.msra.mxu0 %v381_v12 }
  0x99   : > { %v391_v13 = vpop.permute.xlu0 %390 }
  0x9a   : > { %v387_v15 = vpop.permute.xlu1 %386  ;;  %860 = vmatpush3.bf16.msra.mxu1 %v391_v13  ;;  %v394_v16 = vsel %vm392_vm2, %v389_v10, %v391_v13 }
  0x9b   : > { %425 = vmatprep.subr.bf16.mxu0 %v394_v16  ;;  %683 = vmatprep.subr.bf16.mxu1 %v394_v16  ;;  %v393_v17 = vsel %vm392_vm2, %v387_v15, %v389_v10  ;;  %v936_v15 = vld [vmem:[%s1260_s4] sm:$0xff]  }
  0x9c   : > { %426 = vmatpush1.bf16.msra.mxu0 %v393_v17 }
  0x9d   : > { %862 = vmatmul.mubr.msk.bf16.vlgmr.msra.gmra.mrb[0].mxu1 %vm417_vm3, %v934_v14 }
  0x9e   : > { %684 = vmatpush1.bf16.msra.mxu1 %v393_v17  ;;  %715 = vmatprep.mubr.bf16.mxu1 %v1019_v3 }
  0x9f   : > { %836 = vmatmul.mubr.msk.bf16.vlgmr.msra.gmra.mrb[0].mxu0 %vm417_vm3, %v934_v14 }
  0xa0   : > { %635 = vmatprep.mubr.bf16.mxu0 %v1019_v3  ;;  %v662_v3 = vld [vmem:[%s1264_s8] sm:$0xff] }
  0xa5   : > { %844 = vmatmul.mubr.msk.bf16.vlgmr.msra.gmra.mrb[4].mxu1 %vm679_vm4, %v935_v18 }
  0xaa   : > { %v405_v22 = vpop.permute.xlu0 %404 }
  0xab   : > { %v410_v25 = vpop.permute.xlu1 %409 }
 0x170   : > { %v498_v23 = vpop.f32.mrb[0].mxu1 }
 0x171   : > { %v863_v27 = vpop.f32.mrb[1].mxu1  ;;  %v499_v28 = vadd.f32 %v498_v23, %v405_v22 }
 0x172   : > { %v501_v29 = vpop.f32.mrb[2].mxu1  ;;  %v455_v30 = vpop.f32.mrb[0].mxu0 }
 0x173   : > { %v515_v32 = vmul.f32 %v512_v24, %v499_v28  ;;  %v502_v33 = vadd.f32 %v501_v29, %v410_v25  ;;  %v456_v34 = vadd.f32 %v455_v30, %v405_v22  ;;  %v457_v35 = vpop.f32.mrb[1].mxu0  ;;  %v864_v36 = vpop.f32.mrb[3].mxu1  ;;  %vm508_vm5 = vcmp.ge.f32.partialorder %v499_v28, 0.0 }
 0x174   : > { %v458_v37 = vadd.f32 %v457_v35, %v405_v22  ;;  %v459_v38 = vpop.f32.mrb[2].mxu0 }
 0x175   : > { %vm511_vm7 = vcmp.ge.f32.partialorder %v502_v33, 0.0  ;;  %v518_v39 = vmul.f32 %v512_v24, %v502_v33  ;;  %vm506_vm8 = vcmp.ge.f32.partialorder %v456_v34, 0.0  ;;  %v513_v40 = vmul.f32 %v512_v24, %v456_v34  ;;  %v461_v41 = vpop.f32.mrb[3].mxu0 }
 0x176   : > { %v514_v42 = vmul.f32 %v512_v24, %v458_v37  ;;  %v460_v43 = vadd.f32 %v459_v38, %v410_v25  ;;  %v462_v44 = vadd.f32 %v461_v41, %v410_v25  ;;  %vm507_vm10 = vcmp.ge.f32.partialorder %v458_v37, 0.0 }
 0x177   : > { %v519_v45 = vsel %vm506_vm8, %v456_v34, %v513_v40  ;;  %v521_v46 = vsel %vm508_vm5, %v499_v28, %v515_v32  ;;  %v524_v47 = vsel %vm511_vm7, %v502_v33, %v518_v39 }
 0x178   : > { %vm509_vm11 = vcmp.ge.f32.partialorder %v460_v43, 0.0  ;;  %v516_v48 = vmul.f32 %v512_v24, %v460_v43  ;;  %vm510_vm12 = vcmp.ge.f32.partialorder %v462_v44, 0.0  ;;  %v517_v49 = vmul.f32 %v512_v24, %v462_v44  ;;  %v717_v63 = vpop.f32.mrb[4].mxu1 }
 0x179   : > { %v551_v50 = vsel %vm539_vm6, %v521_v46, 0.0  ;;  %v554_v51 = vsel %vm539_vm6, %v524_v47, 0.0  ;;  %v520_v54 = vsel %vm507_vm10, %v458_v37, %v514_v42  ;;  %v549_v58 = vsel %vm534_vm9, %v519_v45, 0.0  ;;  %v719_v0 = vpop.f32.mrb[5].mxu1 }
 0x17a   : > { %v522_v52 = vsel %vm509_vm11, %v460_v43, %v516_v48  ;;  %v557_v53 = vpack.c.bf16 %v554_v51, %v551_v50  ;;  %v523_v55 = vsel %vm510_vm12, %v462_v44, %v517_v49  ;;  %v721_v2 = vpop.f32.mrb[6].mxu1 }
 0x17b   : > { %v840_v56 = vpack.c.bf16 %v522_v52, %v519_v45  ;;  %v556_v57 = vpack.c.bf16 %v523_v55, %v520_v54  ;;  %v552_v59 = vsel %vm534_vm9, %v522_v52, 0.0  ;;  %v723_v4 = vpop.f32.mrb[7].mxu1 }
 0x17c   : > { %565 = vrot.lane.b32.xlu0 %v557_v53, %s1020_s30  ;;  %v555_v60 = vpack.c.bf16 %v552_v59, %v549_v58 }
 0x17d   : > { %563 = vrot.lane.b32.xlu1 %v556_v57, %s1020_s30  ;;  %603 = vmatprep.subr.bf16.mxu0 %v556_v57 }
 0x17e   : > { %841 = vmatpush1.bf16.msk.msra.mxu0 %vm839_vm13, %v840_v56 }
 0x180   : > { %573 = vrot.lane.b32.xlu0 %v556_v57, %s1021_s10 }
 0x181   : > { %561 = vrot.lane.b32.xlu1 %v555_v60, %s1020_s30  ;;  %s937_s30 = scalar_lea.vmem %s1206_s11, 512 }
 0x182   : > { %p938_p12 = scmp.ne.s32.totalorder %s1206_s11, %s937_s30 }
 0x184   : > { %571 = vrot.lane.b32.xlu0 %v555_v60, %s1021_s10  ;;  %p939_p13 = pnand %p938_p12, %p1121_p4 }
 0x185   : > { %575 = vrot.lane.b32.xlu1 %v557_v53, %s1021_s10  ;;  %s941_s10 = sshll.u32 %s1022_s20, 4  ;;  %s942_s10 = int_to_ptr.vmem [resolvable:$false] %s941_s10 }
 0x186   : > { %p940_p0 = pneg %p939_p13  ;;  %s943_s22 = scalar_lea.vmem %s942_s10, 1024 }
 0x187   : > { %p944_p1 = scmp.lt.s32.totalorder %s1206_s11, %s942_s10  ;;  %p945_p2 = scmp.lt.s32.totalorder %s943_s22, %s937_s30 }
 0x188   : > { %592 = vperm.xlu0 %928, %v584_v61  }
 0x189   : > { %587 = vperm.xlu1 %929, %v583_v62   ;;  %p946_p3 = por %p945_p2, %p944_p1 }
 0x18b   : > { %p947_p5 = pnand %p946_p3, %p940_p0 }
 0x18c   : > { %671 = vperm.xlu0 %928, %v663_v1  }
 0x18d   : > { %666 = vperm.xlu1 %929, %v662_v3  }
 0x1ee   : > { %v566_v5 = vpop.permute.xlu0 %565 }
 0x1ef   : > { %v564_v6 = vpop.permute.xlu1 %563 }
 0x1f0   : > { %v568_v7 = vsel %vm380_vm1, %v564_v6, %v566_v5 }
 0x1f1   : > { %605 = vmatprep.subr.bf16.mxu0 %v568_v7 }
 0x1f2   : > { %v574_v8 = vpop.permute.xlu0 %573 }
 0x1f3   : > { %v562_v9 = vpop.permute.xlu1 %561 }
 0x1f4   : > { %v567_v10 = vsel %vm380_vm1, %v562_v9, %v564_v6 }
 0x1f5   : > { %606 = vmatpush1.bf16.msra.mxu0 %v567_v10 }
 0x1f6   : > { %v572_v11 = vpop.permute.xlu0 %571 }
 0x1f7   : > { %v576_v12 = vpop.permute.xlu1 %575  ;;  %v577_v14 = vsel %vm392_vm2, %v572_v11, %v574_v8 }
 0x1f8   : > { %v578_v13 = vsel %vm392_vm2, %v574_v8, %v576_v12 }
 0x1f9   : > { %607 = vmatprep.subr.bf16.mxu0 %v578_v13 }
 0x1fa   : > { %608 = vmatpush1.bf16.msra.mxu0 %v577_v14 }
 0x1fd   : > { %842 = vmatmul.mubr.msk.bf16.vlgmr.msra.gmra.mrb[4].mxu0 %vm417_vm3, %v936_v15 }
 0x207   : > { %v593_v16 = vpop.permute.xlu0 %592 }
 0x208   : > { %v588_v17 = vpop.permute.xlu1 %587 }
 0x20b   : > { %v672_v18 = vpop.permute.xlu0 %671 }
 0x20c   : > { %v667_v21 = vpop.permute.xlu1 %666  ;;  %v722_v26 = vadd.f32 %v721_v2, %v672_v18  ;;  %v724_v39 = vadd.f32 %v723_v4, %v672_v18 }
 0x20d   : > { %v718_v30 = vadd.f32 %v717_v63, %v667_v21  ;;  %v720_v33 = vadd.f32 %v719_v0, %v667_v21 }
 0x2d0   : > { %v637_v19 = vpop.f32.mrb[4].mxu0 }
 0x2d1   : > { %v638_v22 = vadd.f32 %v637_v19, %v588_v17  ;;  %v639_v23 = vpop.f32.mrb[5].mxu0 }
 0x2d2   : > { %v640_v24 = vadd.f32 %v639_v23, %v588_v17  ;;  %v641_v25 = vpop.f32.mrb[6].mxu0 }
 0x2d3   : > { %vm647_vm14 = vcmp.ge.f32.partialorder %v638_v22, 0.0  ;;  %v652_v27 = vmul.f32 %v651_v20, %v638_v22  ;;  %v642_v28 = vadd.f32 %v641_v25, %v593_v16  ;;  %v643_v29 = vpop.f32.mrb[7].mxu0 }
 0x2d4   : > { %vm648_vm15 = vcmp.ge.f32.partialorder %v640_v24, 0.0  ;;  %v653_v31 = vmul.f32 %v651_v20, %v640_v24  ;;  %v644_v32 = vadd.f32 %v643_v29, %v593_v16 }
 0x2d5   : > { %v656_v34 = vsel %vm647_vm14, %v638_v22, %v652_v27  ;;  %vm649_vm0 = vcmp.ge.f32.partialorder %v642_v28, 0.0  ;;  %v654_v35 = vmul.f32 %v651_v20, %v642_v28 }
 0x2d6   : > { %v726_v36 = vadd.f32 %v718_v30, %v656_v34  ;;  %v657_v37 = vsel %vm648_vm15, %v640_v24, %v653_v31  ;;  %vm650_vm1 = vcmp.ge.f32.partialorder %v644_v32, 0.0  ;;  %v655_v38 = vmul.f32 %v651_v20, %v644_v32 }
 0x2d7   : > { %v727_v40 = vadd.f32 %v720_v33, %v657_v37  ;;  %v658_v41 = vsel %vm649_vm0, %v642_v28, %v654_v35 }
 0x2d8   : > { %730 = vst [vmem:[%s341_s29] sm:$0xff] %v726_v36  ;;  %v728_v42 = vadd.f32 %v722_v26, %v658_v41  ;;  %v659_v43 = vsel %vm650_vm1, %v644_v32, %v655_v38 }
 0x2d9   : > { %731 = vst [vmem:[%s341_s29 + $0x8] sm:$0xff] %v727_v40  ;;  %v729_v44 = vadd.f32 %v724_v39, %v659_v43 }
 0x2da   : > { %732 = vst [vmem:[%s341_s29 + $0x10] sm:$0xff] %v728_v42 }
 0x2db   : > { %733 = vst [vmem:[%s341_s29 + $0x18] sm:$0xff] %v729_v44 }
 0x2dc   : > { %950 = shalt.err (!%p947_p5)
}
 0x2dd   : > { %s951_s25 = scalar_lea.hbm %s1204_s6, 512  ;;  %s955_s28 = scalar_lea.hbm %s1265_s9, 1024 }
 0x2de   : > { %p952_p6 = scmp.ne.s32.totalorder %s1204_s6, %s951_s25  ;;  %p956_p10 = scmp.lt.u32.totalorder %s1204_s6, %s1265_s9 }
 0x2df   : > { %p957_p11 = scmp.lt.u32.totalorder %s955_s28, %s951_s25  ;;  %p959_p13 = scmp.lt.u32.totalorder %s951_s25, %s1204_s6 }
 0x2e0   : > { %p953_p7 = pnand %p952_p6, %p1121_p4 }
 0x2e1   : > { %p958_p12 = por %p957_p11, %p956_p10 }
 0x2e2   : > { %p954_p9 = pneg %p953_p7 }
 0x2e3   : > { %p960_p0 = por %p959_p13, %p958_p12 }
 0x2e5   : > { %p961_p1 = pnand %p960_p0, %p954_p9 }
 0x2e7   : > { %964 = shalt.err (!%p961_p1)
}
 0x2e8   : > { %s1023_s3 = smov 256   ;;  %s1024_s30 = smov 16  }
 0x2e9   : > { %866 = dma.vmem_to_hbm [thread:$0]  (%p1121_p4), %s1206_s11, 512, %s1204_s6, %s1210_s16, %s1023_s3, %s1023_s3, %s1024_s30  }
 0x2ea PF: > { %p872_p2 = scmp.ge.s32.totalorder %s1015_s18, 2  ;;  %s765_s20 = sand.u32 1, %s995_s13  }
 0x2eb   : > { %s766_s10 = scalar_lea.sflag [#allocation5], %s765_s20 }
 0x2ec   : > { %p869_p3 = pnand %p872_p2, %p1128_p8 }
 0x2ee   : > { %990 = dma.done.wait (!%p869_p3), %s766_s10, 512  }
 0x2ef   : > { %992 = vsyncadd (!%p869_p3), %s766_s10, 4294966784  ;;  %s24_s18 = sadd.s32 1, %s1015_s18   ;;  %s1268_s13 = smov %s999_s14 }
 0x2f0   : > { %p21_p5 = scmp.ge.s32.totalorder %s24_s18, 4   ;;  %s1269_s14 = smov %s1003_s15 }
 0x2f1   : > { %s1270_s15 = smov %s1134_s24  ;;  %s1271_s16 = smov %s1011_s17 }
 0x2f2   : > { %s1272_s17 = smov %s1274_s19  ;;  %23 = sbr.rel (!%p21_p5) target bundleno = 7 (0x7), region = 92 }
 0x2f9   :  { %771 = vsyncpa [#allocation5], 1 }
 0x2fa   :  { %773 = vsyncpa [#allocation5 + $0x1], 1 }

</bundles_post_ra>
